<compile_context>
chip_gen: v7x
topology: tpu7x:2x2x1
jax: 0.10.0
libtpu: 0.0.40
codegen_flags: <defaults>
</compile_context>

<pallas_src>
import functools
import math

import numpy as np
import jax
import jax.numpy as jnp
from jax import lax
from jax.experimental import pallas as pl
from jax.experimental.pallas import tpu as pltpu


# -----------------------------------------------------------------------------
# Buffer construction (mirrors RotaryPositionEmbedding.__init__, numpy, one-off)
# -----------------------------------------------------------------------------
def make_rope_buffers(num_patches, hidden_size_head, *, ft_seq_len=None,
                      custom_freqs=None, freqs_for="lang", theta=10000.0,
                      max_freq=10, num_freqs=1):
    pt_seq_len = int(num_patches ** 0.5)
    dim = hidden_size_head // 2
    if custom_freqs is not None:
        freqs = np.asarray(custom_freqs, dtype=np.float64)
    elif freqs_for == "lang":
        freqs = 1.0 / (theta ** (np.arange(0, dim, 2)[: dim // 2].astype(np.float64) / dim))
    elif freqs_for == "pixel":
        freqs = np.linspace(1.0, max_freq / 2, dim // 2).astype(np.float64) * math.pi
    elif freqs_for == "constant":
        freqs = np.ones((num_freqs,), dtype=np.float64)
    else:
        raise ValueError(f"unknown modality {freqs_for}")
    if ft_seq_len is None:
        ft_seq_len = pt_seq_len
    t = np.arange(ft_seq_len).astype(np.float64) / ft_seq_len * pt_seq_len
    freqs = np.einsum("i,f->if", t, freqs)                        # (ft, n)
    freqs = np.repeat(freqs, 2, axis=-1)                          # '... n -> ... (n r)', r=2
    a = np.broadcast_to(freqs[:, None, :], (ft_seq_len, ft_seq_len, freqs.shape[-1]))
    b = np.broadcast_to(freqs[None, :, :], (ft_seq_len, ft_seq_len, freqs.shape[-1]))
    freqs2 = np.concatenate([a, b], axis=-1)                      # (ft, ft, head_dim)
    last = freqs2.shape[-1]
    freqs_cos = np.cos(freqs2).reshape(-1, last).astype(np.float32)   # (S, D)
    freqs_sin = np.sin(freqs2).reshape(-1, last).astype(np.float32)   # (S, D)
    return freqs_cos, freqs_sin


# -----------------------------------------------------------------------------
# Layout choice: lane-dense rows, ~1 MiB blocks, >= 8 grid steps when possible
# -----------------------------------------------------------------------------
_SUBLANE = {4: 8, 2: 16, 1: 32}   # f32 / bf16 / int8-fp8 sublane packing


@functools.lru_cache(maxsize=None)
def _choose_layout(n_groups, S, D, itemsize):
    row_elems = S * D
    sublane = _SUBLANE.get(itemsize, 8)

    # Prefer widths that are both lane-dense (W % 128 == 0) and give a
    # sublane-dense row count (rows % sublane == 0) so vregs are fully packed.
    W = None
    for cand in (1024, 512, 256, 128):
        if row_elems % cand == 0 and (row_elems // cand) % sublane == 0:
            W = cand
            break
    if W is None:
        for cand in (1024, 512, 256, 128):
            if row_elems % cand == 0:
                W = cand
                break
    if W is None:
        # TODO(synk): pad S*D up to a multiple of 128 instead; this fallback is
        # correct but produces masked (non-lane-dense) stores when D < 128.
        W = D
    assert W % 2 == 0, "row width must be even so rotate_half pairs stay in-row"

    rows_per_head = row_elems // W
    bytes_per_group = row_elems * itemsize

    # Block sizing: ~1 MiB blocks hit ~85% of HBM roofline and, double-buffered
    # for t and out, fit comfortably in every generation's scoped VMEM
    # (v5e 16 MiB, v6e/v7x 32 MiB).  Then make sure there are >= 8 grid steps
    # (>= 4 per v7x TensorCore) so the software pipeline actually overlaps DMA.
    max_block_bytes = 1 << 20
    divisors = [d for d in range(1, n_groups + 1) if n_groups % d == 0]
    feasible = [d for d in divisors if d * bytes_per_group <= max_block_bytes] or [1]
    g_blk = max(feasible)
    min_steps = 8
    while g_blk > 1 and n_groups // g_blk < min_steps:
        smaller = [d for d in feasible if d < g_blk]
        if not smaller:
            break
        g_blk = max(smaller)
    # TODO(synk): if a single (rows_per_head, W) group ever exceeds a few MiB,
    # also split along the row dimension (not needed for vision-RoPE shapes).
    return W, rows_per_head, g_blk


# -----------------------------------------------------------------------------
# Pallas kernel: elementwise RoPE application (the hot path)
# -----------------------------------------------------------------------------
def _rope_kernel(t_ref, cos_ref, sin_ref, o_ref):
    # t_ref/o_ref: (g_blk, R, W);  cos_ref/sin_ref: (R, W) f32 (sin sign-folded)
    g_blk = t_ref.shape[0]

    def body(g, carry):
        x = t_ref[g].astype(jnp.float32)                 # (R, W), 32-bit for roll
        W = x.shape[-1]
        x_next = pltpu.roll(x, shift=W - 1, axis=1)      # x_next[j] = x[(j+1) % W]
        x_prev = pltpu.roll(x, shift=1, axis=1)          # x_prev[j] = x[(j-1) % W]
        lane = lax.broadcasted_iota(jnp.int32, x.shape, 1)
        # rotate_half lane pairing; wrap lanes are never selected (W is even).
        x_swap = jnp.where((lane % 2) == 0, x_next, x_prev)
        o_ref[g] = (x * cos_ref[...] + x_swap * sin_ref[...]).astype(o_ref.dtype)
        return carry

    lax.fori_loop(0, g_blk, body, 0, unroll=(g_blk <= 8))


def rotary_apply(t, cos_flat, sin_signed_flat):
    """t: (B, H, S, D); tables: flat (S*D,) f32, sin already sign-folded."""
    B, H, S, D = t.shape
    assert D % 2 == 0, "rotate_half requires an even head dimension"
    assert cos_flat.shape == (S * D,) and sin_signed_flat.shape == (S * D,)

    n_groups = B * H
    W, R, g_blk = _choose_layout(n_groups, S, D, t.dtype.itemsize)

    t3 = t.reshape(n_groups, R, W)           # contiguous → free reshape
    cos2 = cos_flat.reshape(R, W)            # free reshape of precomputed table
    sin2 = sin_signed_flat.reshape(R, W)

    grid = (n_groups // g_blk,)
    out3 = pl.pallas_call(
        _rope_kernel,
        out_shape=jax.ShapeDtypeStruct((n_groups, R, W), t.dtype),
        grid=grid,
        in_specs=[
            pl.BlockSpec((g_blk, R, W), lambda i: (i, 0, 0)),   # t
            pl.BlockSpec((R, W), lambda i: (0, 0)),             # cos  (constant, DMA'd once)
            pl.BlockSpec((R, W), lambda i: (0, 0)),             # signed sin (constant)
        ],
        out_specs=pl.BlockSpec((g_blk, R, W), lambda i: (i, 0, 0)),
        compiler_params=pltpu.CompilerParams(
            dimension_semantics=("parallel",)),
    )(t3, cos2, sin2)
    return out3.reshape(B, H, S, D)


# -----------------------------------------------------------------------------
# Module-like wrapper (buffers built once at init, like nn.Module register_buffer)
# -----------------------------------------------------------------------------
class RotaryPositionEmbedding:
    def __init__(self, num_patches, hidden_size, hidden_size_head, ft_seq_len=None,
                 custom_freqs=None, freqs_for="lang", theta=10000, max_freq=10,
                 num_freqs=1, rot_v=False, pix2struct=False, qk_ln=False):
        if pix2struct:
            # TODO(synk): pix2struct=True path (gather of cos/sin rows via
            # rope_position_ids) is not implemented.
            raise NotImplementedError("pix2struct RoPE path not implemented")
        self.num_patches = num_patches
        self.hidden_size = hidden_size
        self.hidden_size_head = hidden_size_head
        self.rot_v = rot_v

        cos, sin = make_rope_buffers(
            num_patches, hidden_size_head, ft_seq_len=ft_seq_len,
            custom_freqs=custom_freqs, freqs_for=freqs_for, theta=float(theta),
            max_freq=max_freq, num_freqs=num_freqs)
        self.freqs_cos = jnp.asarray(cos)          # (S, D), matches torch buffer
        self.freqs_sin = jnp.asarray(sin)          # (S, D), matches torch buffer

        # Precompute (once, numpy) the flat, sign-folded sin table used by the
        # kernel: -sin on even lanes (multiplies x[j+1]), +sin on odd lanes
        # (multiplies x[j-1]).
        sin_flat = sin.reshape(-1)
        even = (np.arange(sin_flat.size) % 2) == 0
        self._cos_flat = jnp.asarray(cos.reshape(-1).astype(np.float32))
        self._sin_signed_flat = jnp.asarray(
            np.where(even, -sin_flat, sin_flat).astype(np.float32))

    def __call__(self, t, **kwargs):
        S, D = self.freqs_cos.shape
        assert t.shape[-2] == S and t.shape[-1] == D, "t must match the rope table"
        return rotary_apply(t, self._cos_flat, self._sin_signed_flat)


# -----------------------------------------------------------------------------
# Pure-JAX reference for validation
# -----------------------------------------------------------------------------
def _rotate_half_ref(x):
    x = x.reshape(*x.shape[:-1], x.shape[-1] // 2, 2)
    x1, x2 = x[..., 0], x[..., 1]
    return jnp.stack((-x2, x1), axis=-1).reshape(*x1.shape[:-1], -1)


def _rope_ref(t, cos, sin):
    return t * cos + _rotate_half_ref(t) * sin


if __name__ == "__main__":
    # Module config: num_patches=64 (pt_seq_len=8 -> S=64), hidden_size_head=32
    num_patches = 64
    hidden_size = 128          # unused by forward, kept for constructor fidelity
    hidden_size_head = 32
    B, H = 2, 4

    rope = RotaryPositionEmbedding(num_patches, hidden_size, hidden_size_head)
    S, D = rope.freqs_cos.shape

    key = jax.random.PRNGKey(0)
    t = jax.random.normal(key, (B, H, S, D), dtype=jnp.float32)

    out = rope(t)
    out = jax.block_until_ready(out)

    ref = _rope_ref(t, rope.freqs_cos, rope.freqs_sin)
    np.testing.assert_allclose(np.asarray(out), np.asarray(ref), rtol=1e-5, atol=1e-5)

    print("KERNEL_OK")
</pallas_src>

<mosaic_0001>
module attributes {stable_mosaic.version = 11 : i64} {
  func.func @_rope_kernel(%arg0: i32, %arg1: memref<1x8x256xf32, #tpu.memory_space<vmem>>, %arg2: memref<8x256xf32, #tpu.memory_space<vmem>>, %arg3: memref<8x256xf32, #tpu.memory_space<vmem>>, %arg4: memref<1x8x256xf32, #tpu.memory_space<vmem>>) attributes {dimension_semantics = [#tpu.dimension_semantics<parallel>], iteration_bounds = array<i64: 8>, scalar_prefetch = 0 : i64, scratch_operands = 0 : i64, tpu.core_type = #tpu.core_type<tc>, window_params = [{transform_indices = @transform_0, window_bounds = array<i64: 1, 8, 256>}, {pipeline_mode = #tpu.pipeline_mode<synchronous>, transform_indices = @transform_1, window_bounds = array<i64: 8, 256>}, {pipeline_mode = #tpu.pipeline_mode<synchronous>, transform_indices = @transform_2, window_bounds = array<i64: 8, 256>}, {transform_indices = @transform_3, window_bounds = array<i64: 1, 8, 256>}]} {
    %c0_i32 = arith.constant 0 : i32
    %0 = arith.index_cast %c0_i32 : i32 to index
    %c0 = arith.constant 0 : index
    %c0_0 = arith.constant 0 : index
    %1 = vector.load %arg1[%0, %c0, %c0_0] : memref<1x8x256xf32, #tpu.memory_space<vmem>>, vector<1x8x256xf32>
    %2 = vector.shape_cast %1 : vector<1x8x256xf32> to vector<8x256xf32>
    %c255_i32 = arith.constant 255 : i32
    %3 = tpu.dynamic_rotate %2 by %c255_i32 dim 1 : vector<8x256xf32>, i32 -> vector<8x256xf32>
    %c1_i32 = arith.constant 1 : i32
    %4 = tpu.dynamic_rotate %2 by %c1_i32 dim 1 : vector<8x256xf32>, i32 -> vector<8x256xf32>
    %5 = tpu.iota {dimensions = array<i32: 1>} : vector<8x256xi32>
    %c2_i32 = arith.constant 2 : i32
    %c0_i32_1 = arith.constant 0 : i32
    %6 = arith.cmpi eq, %c2_i32, %c0_i32_1 : i32
    %c1_i32_2 = arith.constant 1 : i32
    %7 = arith.select %6, %c1_i32_2, %c2_i32 : i32
    %8 = vector.broadcast %7 : i32 to vector<8x256xi32>
    %9 = arith.remsi %5, %8 : vector<8x256xi32>
    %c0_i32_3 = arith.constant 0 : i32
    %10 = vector.broadcast %c0_i32_3 : i32 to vector<8x256xi32>
    %11 = arith.cmpi ne, %9, %10 : vector<8x256xi32>
    %c0_i32_4 = arith.constant 0 : i32
    %12 = vector.broadcast %c0_i32_4 : i32 to vector<8x256xi32>
    %13 = arith.cmpi slt, %9, %12 : vector<8x256xi32>
    %c0_i32_5 = arith.constant 0 : i32
    %14 = arith.cmpi slt, %7, %c0_i32_5 : i32
    %15 = vector.broadcast %14 : i1 to vector<8x256xi1>
    %16 = vector.broadcast %15 : vector<8x256xi1> to vector<8x256xi1>
    %17 = arith.xori %13, %16 : vector<8x256xi1>
    %18 = arith.andi %17, %11 : vector<8x256xi1>
    %19 = vector.broadcast %7 : i32 to vector<8x256xi32>
    %20 = arith.addi %9, %19 : vector<8x256xi32>
    %21 = arith.select %18, %20, %9 : vector<8x256xi1>, vector<8x256xi32>
    %c0_i32_6 = arith.constant 0 : i32
    %22 = vector.broadcast %c0_i32_6 : i32 to vector<8x256xi32>
    %23 = arith.cmpi eq, %21, %22 : vector<8x256xi32>
    %24 = arith.select %23, %3, %4 : vector<8x256xi1>, vector<8x256xf32>
    %c0_7 = arith.constant 0 : index
    %c0_8 = arith.constant 0 : index
    %25 = vector.load %arg2[%c0_7, %c0_8] : memref<8x256xf32, #tpu.memory_space<vmem>>, vector<8x256xf32>
    %26 = arith.mulf %2, %25 : vector<8x256xf32>
    %c0_9 = arith.constant 0 : index
    %c0_10 = arith.constant 0 : index
    %27 = vector.load %arg3[%c0_9, %c0_10] : memref<8x256xf32, #tpu.memory_space<vmem>>, vector<8x256xf32>
    %28 = arith.mulf %24, %27 : vector<8x256xf32>
    %29 = arith.addf %26, %28 : vector<8x256xf32>
    %30 = arith.index_cast %c0_i32 : i32 to index
    %c0_11 = arith.constant 0 : index
    %c0_12 = arith.constant 0 : index
    %31 = vector.load %arg4[%30, %c0_11, %c0_12] : memref<1x8x256xf32, #tpu.memory_space<vmem>>, vector<1x8x256xf32>
    %32 = vector.shape_cast %31 : vector<1x8x256xf32> to vector<8x256xf32>
    %33 = vector.shape_cast %29 : vector<8x256xf32> to vector<1x8x256xf32>
    tpu.vector_store %arg4[%30, %c0_11, %c0_12], %33 {strides = array<i32>} : memref<1x8x256xf32, #tpu.memory_space<vmem>>, vector<1x8x256xf32>,
    %c1_i32_13 = arith.constant 1 : i32
    return
  }
  func.func @transform_0(%arg0: i32) -> (i32, i32, i32) {
    %c0_i32 = arith.constant 0 : i32
    %c0_i32_0 = arith.constant 0 : i32
    %c0_i32_1 = arith.constant 0 : i32
    return %arg0, %c0_i32, %c0_i32_0 : i32, i32, i32
  }
  func.func @transform_1(%arg0: i32) -> (i32, i32) {
    %c0_i32 = arith.constant 0 : i32
    %c0_i32_0 = arith.constant 0 : i32
    %c0_i32_1 = arith.constant 0 : i32
    return %c0_i32, %c0_i32_0 : i32, i32
  }
  func.func @transform_2(%arg0: i32) -> (i32, i32) {
    %c0_i32 = arith.constant 0 : i32
    %c0_i32_0 = arith.constant 0 : i32
    %c0_i32_1 = arith.constant 0 : i32
    return %c0_i32, %c0_i32_0 : i32, i32
  }
  func.func @transform_3(%arg0: i32) -> (i32, i32, i32) {
    %c0_i32 = arith.constant 0 : i32
    %c0_i32_0 = arith.constant 0 : i32
    %c0_i32_1 = arith.constant 0 : i32
    return %arg0, %c0_i32, %c0_i32_0 : i32, i32, i32
  }
}

</mosaic_0001>

<bundles_post_ra>
// kernel: tpu_custom_call.1
= control target key start
LH: loop header
LB: loop body
LE: loop exit
PB: predicated region body
PF: predicated region fallthrough
CT: control target
= control target key end

     0   :  { %8 = vsyncpa [#allocation3], 0  ;;  %s887_s0 = inlined_call_operand.hbm [shape: f32[8,8,256], index: 0, kind: input, shape index: {}]   ;;  %s888_s1 = inlined_call_operand.hbm [shape: f32[8,256], index: 1, kind: input, shape index: {}]   ;;  %s889_s2 = inlined_call_operand.hbm [shape: f32[8,256], index: 2, kind: input, shape index: {}]   ;;  %s890_s3 = inlined_call_operand.hbm [shape: f32[8,8,256], index: 3, kind: output, shape index: {}]  }
   0x1   :  { %10 = vsyncpa [#allocation3 + $0x1], 0 }
   0x2   :  { %11 = vsyncpa [#allocation6], 0 }
   0x3   :  { %12 = vsyncpa [#allocation4], 0 }
   0x4   :  { %14 = vsyncpa [#allocation4 + $0x1], 0  ;;  %s648_s12 = smov 0   ;;  %s650_s13 = smov 0  }
   0x5   :  { %s652_s14 = smov 0   ;;  %s654_s15 = smov 0  }
   0x6 LB: > { %s669_s16 = sadd.s32 4294967295, %s620_s15   ;;  %s375_s17 = sadd.s32 4294967294, %s620_s15   ;;  %s620_s15 = sphi %s654_s15, %s913_s15   ;;  %s616_s14 = sphi %s652_s14, %s912_s14   ;;  %s612_s13 = sphi %s650_s13, %s911_s13   ;;  %s608_s12 = sphi %s648_s12, %s910_s12  }
   0x7   : > { %p40_p0 = scmp.ne.s32.totalorder %s612_s13, %s608_s12  ;;  %p891_p1 = scmp.eq.s32.totalorder %s669_s16, 0 }
   0x8   : > { %p112_p3 = scmp.eq.s32.totalorder %s375_s17, 7  ;;  %p376_p5 = scmp.ge.s32.totalorder %s620_s15, 1 }
   0x9   : > { %p678_p4 = por %p891_p1, %p40_p0  ;;  %p119_p7 = scmp.lt.s32.totalorder %s620_s15, 9 }
   0xa   : > { %p683_p6 = por %p112_p3, %p40_p0  ;;  %s622_s21 = smov [#allocation5]  }
   0xb   : > { %s894_s18 = scalar_select %p678_p4, 1, 0 }
   0xc   : > { %s895_s19 = scalar_select %p683_p6, 1, 0 }
   0xd   : > { %p688_p8 = pnand %p376_p5, %p119_p7  ;;  %s132_s22 = sshll.u32 %s622_s21, 4  ;;  %s133_s22 = int_to_ptr.vmem [resolvable:$true] %s132_s22 }
   0xe   : > { %s623_s23 = smov [#allocation7]   ;;  %s703_s26 = sadd.s32 1, %s620_s15  }
   0xf   : > { %s896_s20 = scalar_select %p688_p8, 1, 0 }
  0x10   : > { %p407_p9 = pneg %p688_p8  ;;  %s143_s24 = sshll.u32 %s623_s23, 4  ;;  %s700_s24 = int_to_ptr.vmem [resolvable:$true] %s143_s24 }
  0x11   : > { %s24_s27 = ssub.s32 %s620_s15, %s703_s26  ;;  %s464_s30 = scalar_lea.hbm %s888_s1, 256 }
  0x12   : > { %p696_p10 = pnand %p407_p9, %p891_p1  ;;  %p465_p11 = scmp.ne.s32.totalorder %s888_s1, %s464_s30 }
  0x13   : > { %p471_p3 = scmp.lt.u32.totalorder %s464_s30, %s888_s1 }
  0x14   : > { %p466_p12 = pneg %p696_p10 }
  0x16   : > { %p467_p13 = pnand %p466_p12, %p465_p11 }
  0x18   : > { %p468_p0 = pneg %p467_p13 }
  0x1a   : > { %p473_p5 = pnand %p471_p3, %p468_p0 }
  0x1c   : > { %476 = shalt.err (!%p473_p5)
}
  0x1d   : > { %s477_s8 = scalar_lea.vmem %s133_s22, 256  ;;  %p485_p2 = scmp.lt.s32.totalorder %s133_s22, %s133_s22 }
  0x1e   : > { %p478_p7 = scmp.ne.s32.totalorder %s133_s22, %s477_s8  ;;  %p486_p6 = scmp.lt.s32.totalorder %s477_s8, %s477_s8 }
  0x20   : > { %p480_p9 = pnand %p478_p7, %p466_p12  ;;  %p487_p4 = por %p486_p6, %p485_p2 }
  0x22   : > { %p481_p1 = pneg %p480_p9 }
  0x24   : > { %p488_p8 = pnand %p487_p4, %p481_p1 }
  0x26   : > { %491 = shalt.err (!%p488_p8)
}
  0x27   : > { %410 = dma.hbm_to_vmem [thread:$0]  (!%p696_p10), %s888_s1, 256, %s133_s22, [#allocation6]  }
  0x28   : > { %s492_s21 = scalar_lea.hbm %s889_s2, 256 }
  0x29   : > { %p493_p11 = scmp.ne.s32.totalorder %s889_s2, %s492_s21  ;;  %p499_p4 = scmp.lt.u32.totalorder %s492_s21, %s889_s2 }
  0x2b   : > { %p495_p2 = pnand %p493_p11, %p466_p12 }
  0x2d   : > { %p496_p1 = pneg %p495_p2 }
  0x2f   : > { %p501_p6 = pnand %p499_p4, %p496_p1 }
  0x31   : > { %504 = shalt.err (!%p501_p6)
}
  0x32   : > { %s505_s22 = scalar_lea.vmem %s700_s24, 256  ;;  %p513_p3 = scmp.lt.s32.totalorder %s700_s24, %s700_s24 }
  0x33   : > { %p506_p8 = scmp.ne.s32.totalorder %s700_s24, %s505_s22  ;;  %p514_p5 = scmp.lt.s32.totalorder %s505_s22, %s505_s22 }
  0x35   : > { %p508_p13 = pnand %p506_p8, %p466_p12  ;;  %p515_p7 = por %p514_p5, %p513_p3 }
  0x37   : > { %p509_p0 = pneg %p508_p13 }
  0x39   : > { %p516_p9 = pnand %p515_p7, %p509_p0 }
  0x3b   : > { %519 = shalt.err (!%p516_p9)
}
  0x3c   : > { %413 = dma.hbm_to_vmem [thread:$0]  (!%p696_p10), %s889_s2, 256, %s700_s24, [#allocation6]  }
  0x3d   : > { %p25_p12 = scmp.eq.s32.totalorder %s24_s27, 0  ;;  %s27_s6 = sadd.s32 1, %s616_s14 }
  0x3e   : > { %p34_p11 = scmp.ne.s32.totalorder %s616_s14, %s612_s13  ;;  %p35_p2 = scmp.eq.s32.totalorder %s620_s15, 0 }
  0x3f   : > { %s762_s25 = scalar_select %p25_p12, %s616_s14, %s27_s6  }
  0x40   : > { %p36_p1 = por %p35_p2, %p34_p11  ;;  %p898_p4 = scmp.eq.s32.totalorder %s669_s16, 7 }
  0x41   : > { %p424_p8 = scmp.lt.s32.totalorder %s620_s15, 8  ;;  %s154_s8 = sand.u32 1, %s616_s14  }
  0x42   : > { %p766_p6 = por %p898_p4, %p34_p11  ;;  %s380_s9 = sshll.u32 %s154_s8, 4 }
  0x43   : > { %s393_s10 = sshll.u32 %s620_s15, 8  ;;  %s158_s27 = scalar_lea.vmem [#allocation2], %s380_s9 }
  0x44   : > { %s776_s24 = scalar_lea.hbm %s887_s0, %s393_s10  ;;  %s166_s21 = sshll.u32 %s158_s27, 4  ;;  %s778_s21 = int_to_ptr.vmem [resolvable:$true] %s166_s21 }
  0x45   : > { %p780_p10 = pnand %p424_p8, %p36_p1  ;;  %s155_s28 = scalar_lea.sflag [#allocation3], %s154_s8 }
  0x46   : > { %s520_s29 = scalar_lea.hbm %s776_s24, 256  ;;  %s525_s4 = scalar_lea.hbm %s887_s0, 2048 }
  0x47   : > { %p521_p13 = scmp.ne.s32.totalorder %s776_s24, %s520_s29  ;;  %p522_p0 = pneg %p780_p10 }
  0x48   : > { %p526_p7 = scmp.lt.u32.totalorder %s776_s24, %s887_s0  ;;  %p527_p9 = scmp.lt.u32.totalorder %s525_s4, %s520_s29 }
  0x49   : > { %p523_p3 = pnand %p522_p0, %p521_p13  ;;  %p529_p11 = scmp.lt.u32.totalorder %s520_s29, %s776_s24 }
  0x4a   : > { %p528_p12 = por %p527_p9, %p526_p7 }
  0x4b   : > { %p524_p5 = pneg %p523_p3 }
  0x4c   : > { %p530_p2 = por %p529_p11, %p528_p12 }
  0x4e   : > { %p531_p1 = pnand %p530_p2, %p524_p5 }
  0x50   : > { %534 = shalt.err (!%p531_p1)
}
  0x51   : > { %s535_s8 = scalar_lea.vmem %s778_s21, 256  ;;  %s624_s9 = smov [#allocation2]  }
  0x52   : > { %p536_p4 = scmp.ne.s32.totalorder %s778_s21, %s535_s8  ;;  %s540_s10 = sshll.u32 %s624_s9, 4  ;;  %s541_s10 = int_to_ptr.vmem [resolvable:$false] %s540_s10 }
  0x53   : > { %s542_s11 = scalar_lea.vmem %s541_s10, 512  ;;  %p543_p3 = scmp.lt.s32.totalorder %s778_s21, %s541_s10 }
  0x54   : > { %p538_p8 = pnand %p536_p4, %p522_p0  ;;  %p544_p7 = scmp.lt.s32.totalorder %s542_s11, %s535_s8 }
  0x56   : > { %p539_p13 = pneg %p538_p8  ;;  %p545_p9 = por %p544_p7, %p543_p3 }
  0x58   : > { %p546_p12 = pnand %p545_p9, %p539_p13 }
  0x5a   : > { %549 = shalt.err (!%p546_p12)
}
  0x5b   : > { %417 = dma.hbm_to_vmem [thread:$0]  (!%p780_p10), %s776_s24, 256, %s778_s21, %s155_s28  }
  0x5c   : > { %p901_p5 = scmp.ne.s32.totalorder %s896_s20, 0 }
  0x5d   : > { %s812_s17 = sand.u32 (!%p901_p5), 1, %s612_s13   ;;  %p902_p0 = scmp.ne.s32.totalorder (!%p901_p5), %s894_s18, 0 }
  0x5e   : > { %175 = sbr.rel (%p901_p5) target bundleno = 245 (0xf5), region = 32  ;;  %s384_s27 = sshll.u32 (!%p901_p5), %s812_s17, 4 }
  0x5f   : > { %s178_s29 = scalar_lea.sflag (!%p901_p5), [#allocation3], %s812_s17  ;;  %s181_s30 = scalar_lea.vmem (!%p901_p5), [#allocation2], %s384_s27 }
  0x65   : > { %595 = dma.done.wait (%p902_p0), %s178_s29, 256  }
  0x66   : > { %597 = vsyncadd (%p902_p0), %s178_s29, 4294967040  ;;  %p903_p10 = scmp.eq.s32.totalorder %s669_s16, 0 }
  0x68   : > { %599 = dma.done.wait (%p903_p10), [#allocation6], 512   ;;  %p904_p11 = pmov %p903_p10 }
  0x69   : > { %v212_v0 = vld [vmem:[%s181_s30] sm:$0xff]  ;;  %s625_s20 = smov 1   ;;  %s626_s24 = smov 127   ;;  %v213_v1 = vld [vmem:[%s181_s30 + $0x8] sm:$0xff]  ;;  %v218_v2 = vlaneseq }
  0x6a   : > { %601 = vsyncadd (%p904_p11), [#allocation6], 4294966784  ;;  %223 = vrot.lane.b32.xlu1 %v212_v0, %s625_s20  ;;  %214 = vrot.lane.b32.xlu0 %v212_v0, %s626_s24  ;;  %v259_v9 = vld [vmem:[#allocation5] sm:$0xff]  ;;  %v260_v10 = vld [vmem:[#allocation5 + $0x8] sm:$0xff]  ;;  %s394_s18 = sshll.u32 %s669_s16, 8  ;;  %s211_s21 = scalar_lea.vmem [#allocation8], %s384_s27 }
  0x6b   : > { %v219_v3 = vand.u32 127, %v218_v2  ;;  %v261_v13 = vmul.f32 %v259_v9, %v212_v0  ;;  %v262_v14 = vmul.f32 %v260_v10, %v213_v1  ;;  %v263_v16 = vld [vmem:[#allocation7] sm:$0xff]  ;;  %v264_v17 = vld [vmem:[#allocation7 + $0x8] sm:$0xff]  ;;  %s286_s23 = sshll.u32 %s211_s21, 4  ;;  %s844_s4 = scalar_lea.hbm %s890_s3, %s394_s18  ;;  %s846_s23 = int_to_ptr.vmem [resolvable:$true] %s286_s23 }
  0x6c   : > { %s272_s16 = scalar_lea.sflag [#allocation4], %s812_s17  ;;  %s550_s5 = scalar_lea.vmem %s846_s23, 256 }
  0x6d   : > { %v230_v4 = vadd.s32 128, %v219_v3  ;;  %v235_v5 = vand.u32 1, %v219_v3  ;;  %vm227_vm0 = vcmp.lt.s32.totalorder %v219_v3, 1  ;;  %vm220_vm1 = vcmp.lt.s32.totalorder %v219_v3, 127  ;;  %p551_p2 = scmp.ne.s32.totalorder %s846_s23, %s550_s5  ;;  %s627_s6 = smov [#allocation8]  }
  0x6e   : > { %225 = vrot.lane.b32.xlu1 %v213_v1, %s625_s20  ;;  %216 = vrot.lane.b32.xlu0 %v213_v1, %s626_s24  ;;  %s554_s8 = sshll.u32 %s627_s6, 4  ;;  %s555_s8 = int_to_ptr.vmem [resolvable:$false] %s554_s8 }
  0x6f   : > { %v242_v6 = vand.u32 1, %v230_v4  ;;  %vm826_vm2 = vcmp.eq.s32.totalorder %v235_v5, 0  ;;  %p552_p1 = pnand %p551_p2, %p766_p6  ;;  %s556_s9 = scalar_lea.vmem %s555_s8, 512 }
  0x70   : > { %p557_p8 = scmp.lt.s32.totalorder %s846_s23, %s555_s8  ;;  %p558_p13 = scmp.lt.s32.totalorder %s556_s9, %s550_s5 }
  0x71   : > { %vm830_vm3 = vcmp.eq.s32.totalorder %v242_v6, 0  ;;  %p553_p4 = pneg %p552_p1 }
  0x72   : > { %p559_p3 = por %p558_p13, %p557_p8 }
  0x74   : > { %p560_p7 = pnand %p559_p3, %p553_p4 }
  0xdc   : > { %v224_v7 = vpop.permute.xlu1 %223  ;;  %v215_v8 = vpop.permute.xlu0 %214 }
  0xe0   : > { %v226_v15 = vpop.permute.xlu1 %225  ;;  %v217_v18 = vpop.permute.xlu0 %216 }
  0xe1   : > { %v228_v19 = vsel %vm227_vm0, %v224_v7, %v226_v15  ;;  %v229_v20 = vsel %vm227_vm0, %v226_v15, %v224_v7  ;;  %v221_v21 = vsel %vm220_vm1, %v215_v8, %v217_v18  ;;  %v222_v22 = vsel %vm220_vm1, %v217_v18, %v215_v8 }
  0xe2   : > { %v257_v23 = vsel %vm826_vm2, %v221_v21, %v229_v20  ;;  %v258_v24 = vsel %vm830_vm3, %v222_v22, %v228_v19 }
  0xe3   : > { %v265_v25 = vmul.f32 %v263_v16, %v257_v23  ;;  %v266_v26 = vmul.f32 %v264_v17, %v258_v24 }
  0xe5   : > { %v267_v27 = vadd.f32 %v265_v25, %v261_v13  ;;  %v268_v28 = vadd.f32 %v266_v26, %v262_v14 }
  0xe7   : > { %269 = vst [vmem:[%s211_s21] sm:$0xff] %v267_v27  ;;  %270 = vst [vmem:[%s211_s21 + $0x8] sm:$0xff] %v268_v28 }
  0xe8   : > { %563 = shalt.err (!%p560_p7)
}
  0xe9   : > { %s564_s10 = scalar_lea.hbm %s844_s4, 256  ;;  %s568_s27 = scalar_lea.hbm %s890_s3, 2048 }
  0xea   : > { %p565_p9 = scmp.ne.s32.totalorder %s844_s4, %s564_s10  ;;  %p569_p0 = scmp.lt.u32.totalorder %s844_s4, %s890_s3 }
  0xeb   : > { %p570_p10 = scmp.lt.u32.totalorder %s568_s27, %s564_s10  ;;  %p572_p2 = scmp.lt.u32.totalorder %s564_s10, %s844_s4 }
  0xec   : > { %p566_p12 = pnand %p565_p9, %p766_p6 }
  0xed   : > { %p571_p11 = por %p570_p10, %p569_p0 }
  0xee   : > { %p567_p5 = pneg %p566_p12 }
  0xef   : > { %p573_p1 = por %p572_p2, %p571_p11 }
  0xf1   : > { %p574_p4 = pnand %p573_p1, %p567_p5 }
  0xf3   : > { %577 = shalt.err (!%p574_p4)
}
  0xf4   : > { %405 = dma.vmem_to_hbm [thread:$0]  (%p766_p6), %s846_s23, 256, %s844_s4, %s272_s16  }
  0xf5 PF: > { %p427_p8 = scmp.ge.s32.totalorder %s620_s15, 2  ;;  %s298_s20 = sand.u32 1, %s608_s12  }
  0xf6   : > { %p909_p13 = scmp.ne.s32.totalorder %s895_s19, 0  ;;  %s299_s24 = scalar_lea.sflag [#allocation4], %s298_s20 }
  0xf8   : > { %p419_p3 = pnand %p427_p8, %p909_p13 }
  0xfa   : > { %603 = dma.done.wait (!%p419_p3), %s299_s24, 256  }
  0xfb   : > { %605 = vsyncadd (!%p419_p3), %s299_s24, 4294967040  ;;  %p17_p7 = scmp.ge.s32.totalorder %s703_s26, 10   ;;  %s910_s12 = smov %s612_s13 }
  0xfc   : > { %s911_s13 = smov %s616_s14  ;;  %s912_s14 = smov %s762_s25 }
  0xfd   : > { %s913_s15 = smov %s703_s26  ;;  %19 = sbr.rel (!%p17_p7) target bundleno = 6 (0x6), region = 85 }
 0x104   :  { %304 = vsyncpa [#allocation3], 1 }
 0x105   :  { %306 = vsyncpa [#allocation3 + $0x1], 1 }
 0x106   :  { %307 = vsyncpa [#allocation6], 1 }
 0x107   :  { %308 = vsyncpa [#allocation4], 1 }
 0x108   :  { %310 = vsyncpa [#allocation4 + $0x1], 1 }

</bundles_post_ra>
